<compile_context>
chip_gen: v6e
topology: v6e:2x2x1
jax: 0.10.0
libtpu: 0.0.40
codegen_flags: <defaults>
</compile_context>

<pallas_src>
import jax
import jax.numpy as jnp
from jax.experimental import pallas as pl
from jax.experimental.pallas import tpu as pltpu


def _attention_kernel(v_ref, q_ref, w1v_ref, w1q_ref, b1_ref, w2_ref, b2_ref,
                      o_ref):
    # v_ref:  (Bb*K, VDIM)   q_ref: (Bb, QDIM)     (possibly bf16)
    # w1v:    (VDIM, H)      w1q:   (QDIM, H)      (possibly bf16)
    # b1:     (1, H) f32     w2:    (H, 1) f32     b2: (1,) f32 in SMEM
    # o_ref:  (Bb, K, 1) f32 -- PyTorch output layout, softmax over K (sublanes)
    Bb, K, _ = o_ref.shape
    H = b1_ref.shape[-1]

    # Fused "concat + Linear": vq @ W1^T == v @ W1_v + q @ W1_q
    hv = jnp.dot(v_ref[...], w1v_ref[...],
                 preferred_element_type=jnp.float32)          # [Bb*K, H]
    hq = jnp.dot(q_ref[...], w1q_ref[...],
                 preferred_element_type=jnp.float32)          # [Bb, H]
    # Fold b1 into the small [Bb, H] tensor once (not into the big tensor).
    hq = hq + b1_ref[...]

    h = jnp.maximum(hv.reshape(Bb, K, H) + hq[:, None, :], 0.0)   # [Bb, K, H]

    # Second layer (out_features == 1) on the MXU, which has plenty of slack
    # at these contraction/output widths.
    logits = jnp.dot(h.reshape(Bb * K, H), w2_ref[...],
                     preferred_element_type=jnp.float32)          # [Bb*K, 1]
    logits = logits.reshape(Bb, K, 1) + b2_ref[0]                 # [Bb, K, 1]

    # softmax over K (sublane axis) -- output stays in the PyTorch layout.
    m = jnp.max(logits, axis=1, keepdims=True)                    # [Bb, 1, 1]
    e = jnp.exp(logits - m)                                       # [Bb, K, 1]
    s = jnp.sum(e, axis=1, keepdims=True)                         # [Bb, 1, 1]
    o_ref[...] = e * pl.reciprocal(s, approx=True)                # EUP vrcp


def _pick_block_b(B, K):
    """Batch tile: ~512-2048 v rows per step, >=4 grid steps when possible.

    block_b is constrained to a multiple of 8 whenever block_b < B so the
    (block_b, QDIM), (block_b*K, VDIM) and (block_b, K, 1) blocks satisfy the
    (8, 128) divisibility rule.
    """
    if B <= 8:
        return B                      # too small to tile; single block
    candidates = [b for b in range(8, B + 1, 8) if B % b == 0]
    if not candidates:
        return B
    target_rows = 1024

    def score(b):
        steps = B // b
        step_pref = 0 if steps >= 4 else (1 if steps >= 2 else 2)
        return (step_pref, abs(b * K - target_rows))

    return min(candidates, key=score)


def attention_just(v, q, w1, b1, w2, b2, *, block_b=None, mxu_dtype=None):
    """v: [B,K,VDIM], q: [B,QDIM]. Weights in PyTorch Linear convention:
       w1: [H, VDIM+QDIM], b1: [H], w2: [1, H], b2: [1].
       Returns softmax weights of shape [B, K, 1].

       mxu_dtype: optional dtype (e.g. jnp.bfloat16) for the first-matmul
       inputs (v, q, W1) on mem-bound generations; epilogue stays f32."""
    B, K, VDIM = v.shape
    QDIM = q.shape[1]
    H = w1.shape[0]

    if block_b is None:
        block_b = _pick_block_b(B, K)
    assert B % block_b == 0, "block_b must divide B"
    if block_b < B:
        assert block_b % 8 == 0, "block_b must be a multiple of 8 when < B"
    grid = (B // block_b,)

    in_dtype = jnp.dtype(mxu_dtype) if mxu_dtype is not None else v.dtype
    itemsize = jnp.dtype(in_dtype).itemsize

    # Split & transpose W1 so the kernel never needs an explicit concat.
    w1_v = jnp.transpose(w1[:, :VDIM]).astype(in_dtype)        # [VDIM, H]
    w1_q = jnp.transpose(w1[:, VDIM:]).astype(in_dtype)        # [QDIM, H]
    b1_r = b1.reshape(1, H).astype(jnp.float32)
    w2_c = jnp.transpose(w2).astype(jnp.float32)               # [H, 1] column
    b2_r = b2.reshape(1).astype(jnp.float32)                   # scalar -> SMEM

    # Batch collapsed into the M dimension of the first matmul.
    v2d = v.reshape(B * K, VDIM).astype(in_dtype)
    q_in = q.astype(in_dtype)

    # Advisory cost estimate (this kernel is HBM-bound on the v stream).
    flops = 2 * B * K * VDIM * H + 2 * B * QDIM * H + 2 * B * K * H
    bytes_accessed = ((B * K * VDIM + B * QDIM) * itemsize
                      + (VDIM * H + QDIM * H) * itemsize
                      + (2 * H + 1) * 4
                      + B * K * 4)
    cost = pl.CostEstimate(flops=flops,
                           transcendentals=B * K + B,
                           bytes_accessed=bytes_accessed)

    # Scoped-VMEM budget: double-buffered I/O tiles + resident weights, with
    # 4x headroom, capped below v7x's 64 MiB physical VMEM.
    vmem_need = (2 * (block_b * K * VDIM + block_b * QDIM) * itemsize
                 + 2 * block_b * K * 4
                 + (VDIM * H + QDIM * H) * itemsize + 2 * H * 4)
    vmem_limit = int(min(48 << 20, max(32 << 20, 4 * vmem_need)))

    # TODO(synk): for K not a multiple of 8 the in-kernel (Bb*K,H)<->(Bb,K,H)
    # reshapes may materialize VMEM copies (perf only); pad K in the wrapper
    # if that ever matters. For very large K, add an "arbitrary" K grid axis
    # with an online softmax.
    out = pl.pallas_call(
        _attention_kernel,
        out_shape=jax.ShapeDtypeStruct((B, K, 1), jnp.float32),
        grid=grid,
        in_specs=[
            pl.BlockSpec((block_b * K, VDIM), lambda i: (i, 0)),
            pl.BlockSpec((block_b, QDIM), lambda i: (i, 0)),
            pl.BlockSpec((VDIM, H), lambda i: (0, 0)),
            pl.BlockSpec((QDIM, H), lambda i: (0, 0)),
            pl.BlockSpec((1, H), lambda i: (0, 0)),
            pl.BlockSpec((H, 1), lambda i: (0, 0)),
            pl.BlockSpec(memory_space=pltpu.MemorySpace.SMEM),   # b2 scalar
        ],
        out_specs=pl.BlockSpec((block_b, K, 1), lambda i: (i, 0, 0)),
        compiler_params=pltpu.CompilerParams(
            dimension_semantics=("parallel",),
            vmem_limit_bytes=vmem_limit),
        cost_estimate=cost,
    )(v2d, q_in, w1_v, w1_q, b1_r, w2_c, b2_r)

    return out


def attention_just_ref(v, q, w1, b1, w2, b2):
    """Pure-JAX reference mirroring the PyTorch forward exactly."""
    B, K, VDIM = v.shape
    q_rep = jnp.broadcast_to(q[:, None, :], (B, K, q.shape[1]))
    vq = jnp.concatenate([v, q_rep], axis=2)
    h = jnp.maximum(vq @ w1.T + b1, 0.0)
    logits = h @ w2.T + b2                                    # [B, K, 1]
    return jax.nn.softmax(logits, axis=1)


if __name__ == "__main__":
    B, K, VDIM, QDIM, H = 2, 8, 16, 16, 32

    key = jax.random.PRNGKey(0)
    kv, kq, kw1, kb1, kw2, kb2 = jax.random.split(key, 6)

    v = jax.random.normal(kv, (B, K, VDIM), dtype=jnp.float32)
    q = jax.random.normal(kq, (B, QDIM), dtype=jnp.float32)

    # Deterministic parameter init (PyTorch Linear shapes: [out, in]).
    w1 = 0.1 * jax.random.normal(kw1, (H, VDIM + QDIM), dtype=jnp.float32)
    b1 = 0.1 * jax.random.normal(kb1, (H,), dtype=jnp.float32)
    w2 = 0.1 * jax.random.normal(kw2, (1, H), dtype=jnp.float32)
    b2 = 0.1 * jax.random.normal(kb2, (1,), dtype=jnp.float32)

    ref = attention_just_ref(v, q, w1, b1, w2, b2)

    # f32 MXU inputs (tolerances relaxed for the EUP approximate reciprocal).
    out = jax.block_until_ready(attention_just(v, q, w1, b1, w2, b2))
    assert out.shape == (B, K, 1)
    assert jnp.allclose(out, ref, atol=1e-2, rtol=1e-2)
    assert jnp.allclose(jnp.sum(out, axis=1), 1.0, atol=1e-2)

    # bf16 MXU-input path (mem-bound generations): looser tolerance.
    out_bf16 = jax.block_until_ready(
        attention_just(v, q, w1, b1, w2, b2, mxu_dtype=jnp.bfloat16))
    assert out_bf16.shape == (B, K, 1)
    assert jnp.allclose(out_bf16, ref, atol=5e-2, rtol=5e-2)

    print("KERNEL_OK")
</pallas_src>

<mosaic_0001>
module attributes {stable_mosaic.version = 11 : i64} {
  func.func @_attention_kernel(%arg0: i32, %arg1: memref<16x16xf32, #tpu.memory_space<vmem>>, %arg2: memref<2x16xf32, #tpu.memory_space<vmem>>, %arg3: memref<16x32xf32, #tpu.memory_space<vmem>>, %arg4: memref<16x32xf32, #tpu.memory_space<vmem>>, %arg5: memref<1x32xf32, #tpu.memory_space<vmem>>, %arg6: memref<32x1xf32, #tpu.memory_space<vmem>>, %arg7: memref<1xf32, #tpu.memory_space<smem>>, %arg8: memref<2x8x1xf32, #tpu.memory_space<vmem>>) attributes {dimension_semantics = [#tpu.dimension_semantics<parallel>], iteration_bounds = array<i64: 1>, scalar_prefetch = 0 : i64, scratch_operands = 0 : i64, tpu.core_type = #tpu.core_type<tc>, window_params = [{transform_indices = @transform_0, window_bounds = array<i64: 16, 16>}, {transform_indices = @transform_1, window_bounds = array<i64: 2, 16>}, {pipeline_mode = #tpu.pipeline_mode<synchronous>, transform_indices = @transform_2, window_bounds = array<i64: 16, 32>}, {pipeline_mode = #tpu.pipeline_mode<synchronous>, transform_indices = @transform_3, window_bounds = array<i64: 16, 32>}, {pipeline_mode = #tpu.pipeline_mode<synchronous>, transform_indices = @transform_4, window_bounds = array<i64: 1, 32>}, {pipeline_mode = #tpu.pipeline_mode<synchronous>, transform_indices = @transform_5, window_bounds = array<i64: 32, 1>}, {transform_indices = @transform_6, window_bounds = array<i64: 1>}, {transform_indices = @transform_7, window_bounds = array<i64: 2, 8, 1>}]} {
    %c0 = arith.constant 0 : index
    %c0_0 = arith.constant 0 : index
    %0 = vector.load %arg1[%c0, %c0_0] : memref<16x16xf32, #tpu.memory_space<vmem>>, vector<16x16xf32>
    %c0_1 = arith.constant 0 : index
    %c0_2 = arith.constant 0 : index
    %1 = vector.load %arg3[%c0_1, %c0_2] : memref<16x32xf32, #tpu.memory_space<vmem>>, vector<16x32xf32>
    %cst = arith.constant dense<0.000000e+00> : vector<16x32xf32>
    %2 = tpu.matmul %0, %1, %cst {dimension_numbers = #tpu.dot_dimension_numbers<[1], [0], [0], [1], [0, 0, 1, 1], [], []>} : vector<16x16xf32>, vector<16x32xf32>, vector<16x32xf32> -> vector<16x32xf32>
    %c0_3 = arith.constant 0 : index
    %c0_4 = arith.constant 0 : index
    %3 = vector.load %arg2[%c0_3, %c0_4] : memref<2x16xf32, #tpu.memory_space<vmem>>, vector<2x16xf32>
    %c0_5 = arith.constant 0 : index
    %c0_6 = arith.constant 0 : index
    %4 = vector.load %arg4[%c0_5, %c0_6] : memref<16x32xf32, #tpu.memory_space<vmem>>, vector<16x32xf32>
    %cst_7 = arith.constant dense<0.000000e+00> : vector<2x32xf32>
    %5 = tpu.matmul %3, %4, %cst_7 {dimension_numbers = #tpu.dot_dimension_numbers<[1], [0], [0], [1], [0, 0, 1, 1], [], []>} : vector<2x16xf32>, vector<16x32xf32>, vector<2x32xf32> -> vector<2x32xf32>
    %c0_8 = arith.constant 0 : index
    %c0_9 = arith.constant 0 : index
    %6 = vector.load %arg5[%c0_8, %c0_9] : memref<1x32xf32, #tpu.memory_space<vmem>>, vector<1x32xf32>
    %7 = vector.broadcast %6 : vector<1x32xf32> to vector<2x32xf32>
    %8 = arith.addf %5, %7 : vector<2x32xf32>
    %9 = vector.shape_cast %2 : vector<16x32xf32> to vector<2x8x32xf32>
    %10 = vector.shape_cast %8 : vector<2x32xf32> to vector<2x1x32xf32>
    %11 = vector.broadcast %10 : vector<2x1x32xf32> to vector<2x8x32xf32>
    %12 = arith.addf %9, %11 : vector<2x8x32xf32>
    %cst_10 = arith.constant 0.000000e+00 : f32
    %13 = vector.broadcast %cst_10 : f32 to vector<2x8x32xf32>
    %14 = arith.maximumf %12, %13 : vector<2x8x32xf32>
    %15 = vector.shape_cast %14 : vector<2x8x32xf32> to vector<16x32xf32>
    %c0_11 = arith.constant 0 : index
    %c0_12 = arith.constant 0 : index
    %16 = vector.load %arg6[%c0_11, %c0_12] : memref<32x1xf32, #tpu.memory_space<vmem>>, vector<32x1xf32>
    %cst_13 = arith.constant dense<0.000000e+00> : vector<16x1xf32>
    %17 = tpu.matmul %15, %16, %cst_13 {dimension_numbers = #tpu.dot_dimension_numbers<[1], [0], [0], [1], [0, 0, 1, 1], [], []>} : vector<16x32xf32>, vector<32x1xf32>, vector<16x1xf32> -> vector<16x1xf32>
    %18 = vector.shape_cast %17 : vector<16x1xf32> to vector<2x8x1xf32>
    %c0_14 = arith.constant 0 : index
    %19 = memref.load %arg7[%c0_14] : memref<1xf32, #tpu.memory_space<smem>>
    %20 = vector.broadcast %19 : f32 to vector<2x8x1xf32>
    %21 = arith.addf %18, %20 : vector<2x8x1xf32>
    %cst_15 = arith.constant dense<0xFF800000> : vector<2x1xf32>
    %22 = vector.multi_reduction <maximumf>, %21, %cst_15 [1] : vector<2x8x1xf32> to vector<2x1xf32>
    %23 = vector.shape_cast %22 : vector<2x1xf32> to vector<2x1x1xf32>
    %24 = vector.broadcast %23 : vector<2x1x1xf32> to vector<2x8x1xf32>
    %25 = arith.subf %21, %24 : vector<2x8x1xf32>
    %26 = math.exp %25 : vector<2x8x1xf32>
    %cst_16 = arith.constant dense<0.000000e+00> : vector<2x1xf32>
    %27 = vector.multi_reduction <add>, %26, %cst_16 [1] : vector<2x8x1xf32> to vector<2x1xf32>
    %28 = vector.shape_cast %27 : vector<2x1xf32> to vector<2x1x1xf32>
    %29 = tpu.reciprocal %28 {approx = true} : vector<2x1x1xf32> -> vector<2x1x1xf32>
    %30 = vector.broadcast %29 : vector<2x1x1xf32> to vector<2x8x1xf32>
    %31 = arith.mulf %26, %30 : vector<2x8x1xf32>
    %c0_17 = arith.constant 0 : index
    %c0_18 = arith.constant 0 : index
    %c0_19 = arith.constant 0 : index
    %32 = vector.load %arg8[%c0_17, %c0_18, %c0_19] : memref<2x8x1xf32, #tpu.memory_space<vmem>>, vector<2x8x1xf32>
    tpu.vector_store %arg8[%c0_17, %c0_18, %c0_19], %31 {strides = array<i32>} : memref<2x8x1xf32, #tpu.memory_space<vmem>>, vector<2x8x1xf32>,
    return
  }
  func.func @transform_0(%arg0: i32) -> (i32, i32) {
    %c0_i32 = arith.constant 0 : i32
    %c0_i32_0 = arith.constant 0 : i32
    return %arg0, %c0_i32 : i32, i32
  }
  func.func @transform_1(%arg0: i32) -> (i32, i32) {
    %c0_i32 = arith.constant 0 : i32
    %c0_i32_0 = arith.constant 0 : i32
    return %arg0, %c0_i32 : i32, i32
  }
  func.func @transform_2(%arg0: i32) -> (i32, i32) {
    %c0_i32 = arith.constant 0 : i32
    %c0_i32_0 = arith.constant 0 : i32
    %c0_i32_1 = arith.constant 0 : i32
    return %c0_i32, %c0_i32_0 : i32, i32
  }
  func.func @transform_3(%arg0: i32) -> (i32, i32) {
    %c0_i32 = arith.constant 0 : i32
    %c0_i32_0 = arith.constant 0 : i32
    %c0_i32_1 = arith.constant 0 : i32
    return %c0_i32, %c0_i32_0 : i32, i32
  }
  func.func @transform_4(%arg0: i32) -> (i32, i32) {
    %c0_i32 = arith.constant 0 : i32
    %c0_i32_0 = arith.constant 0 : i32
    %c0_i32_1 = arith.constant 0 : i32
    return %c0_i32, %c0_i32_0 : i32, i32
  }
  func.func @transform_5(%arg0: i32) -> (i32, i32) {
    %c0_i32 = arith.constant 0 : i32
    %c0_i32_0 = arith.constant 0 : i32
    %c0_i32_1 = arith.constant 0 : i32
    return %c0_i32, %c0_i32_0 : i32, i32
  }
  func.func @transform_6(%arg0: i32) -> i32 {
    %c0_i32 = arith.constant 0 : i32
    %c0_i32_0 = arith.constant 0 : i32
    return %c0_i32 : i32
  }
  func.func @transform_7(%arg0: i32) -> (i32, i32, i32) {
    %c0_i32 = arith.constant 0 : i32
    %c0_i32_0 = arith.constant 0 : i32
    %c0_i32_1 = arith.constant 0 : i32
    return %arg0, %c0_i32, %c0_i32_0 : i32, i32, i32
  }
}

</mosaic_0001>

<bundles_post_ra>
// kernel: tpu_custom_call.1
= control target key start
LH: loop header
LB: loop body
LE: loop exit
PB: predicated region body
PF: predicated region fallthrough
CT: control target
= control target key end

     0   :  { %13 = vsyncpa [#allocation4], 0  ;;  %s463_s24 = smov [#allocation3]   ;;  %s560_s0 = inlined_call_operand.vmem [shape: f32[16,16], index: 0, kind: input, shape index: {}]   ;;  %s561_s1 = inlined_call_operand.vmem [shape: f32[2,16], index: 1, kind: input, shape index: {}]   ;;  %s562_s2 = inlined_call_operand.vmem [shape: f32[16,32], index: 2, kind: input, shape index: {}]   ;;  %s563_s3 = inlined_call_operand.hbm [shape: f32[16,32], index: 3, kind: input, shape index: {}]   ;;  %s564_s4 = inlined_call_operand.vmem [shape: f32[1,32], index: 4, kind: input, shape index: {}]   ;;  %s565_s5 = inlined_call_operand.vmem [shape: f32[32,1], index: 5, kind: input, shape index: {}]   ;;  %s566_s6 = inlined_call_operand.<no memory space> [shape: f32[1], index: 6, kind: input, shape index: {}]   ;;  %s567_s7 = inlined_call_operand.vmem [shape: f32[2,8,1], index: 7, kind: output, shape index: {}]  }
   0x1   :  { %s25_s25 = sshll.u32 %s463_s24, 4  ;;  %s26_s25 = int_to_ptr.vmem [resolvable:$true] %s25_s25 }
   0x2   :  { %s449_s26 = scalar_lea.vmem %s26_s25, 256  ;;  %p454_p1 = scmp.lt.s32.totalorder %s26_s25, %s26_s25 }
   0x3   :  { %p450_p0 = scmp.ne.s32.totalorder %s26_s25, %s449_s26  ;;  %p455_p2 = scmp.lt.s32.totalorder %s449_s26, %s449_s26 }
   0x5   :  { %p456_p3 = por %p455_p2, %p454_p1 }
   0x7   :  { %p457_p4 = pnand %p456_p3, %p450_p0 }
   0x9   :  { %460 = shalt.err (!%p457_p4)
}
   0xa   :  { %s464_s27 = smov 128   ;;  %s465_s28 = smov 8  }
   0xb   :  { %31 = dma.hbm_to_vmem [thread:$0]  %s563_s3, 256, %s26_s25, [#allocation4], %s464_s27, %s464_s27, %s465_s28  }
   0xc   :  { %461 = dma.done.wait [#allocation4], 256  }
   0xd   :  { %462 = vsyncadd [#allocation4], 4294967040  ;;  %vm45_vm0 = vcmask 130048   ;;  %v44_v0 = vld [vmem:[%s562_s2 + $0x8] sm:$0xff]  ;;  %v43_v1 = vld [vmem:[%s562_s2] sm:$0xff]  ;;  %v466_v5 = vmov 0.0   ;;  %v214_v14 = vlaneseq  ;;  %v334_v35 = vstv %s566_s6 }
   0xe   :  { %v41_v2 = vld [vmem:[%s560_s0] sm:$0xff]  ;;  %402 = vmatprep.subr.mxu1 %v44_v0  ;;  %v42_v3 = vld [vmem:[%s560_s0 + $0x8] sm:$0xff]  ;;  %vm467_vm1 = vmmov 0   ;;  %v250_v8 = vld [vmem:[%s565_s5 + $0x18] sm:$0xff]  ;;  %v468_v12 = vmov 1966171168  }
   0xf   :  { %406 = vmatprep.mubr.msk.f32.mxu1 %vm45_vm0, %v41_v2  ;;  %403 = vmatpush3.msra.mxu1 %v44_v0  ;;  %v129_v4 = vld [vmem:[#allocation3 + $0x8] sm:$0xff]  ;;  %v128_v6 = vld [vmem:[#allocation3] sm:$0xff]  ;;  %v249_v9 = vld [vmem:[%s565_s5 + $0x10] sm:$0xff]  ;;  %v212_v13 = vunpack.c.l.s4 %v468_v12  ;;  %v215_v16 = vshrl.u32 %v214_v14, 7  ;;  %vm251_vm2 = vcmask 261120   ;;  %vm337_vm3 = vcmask 7168  }
  0x10   :  { %404 = vmatprep.subr.mxu1 %v43_v1  ;;  %v127_v7 = vld [vmem:[%s561_s1] sm:$0x3]  ;;  %416 = vmatprep.subr.mxu0 %v250_v8  ;;  %v248_v10 = vld [vmem:[%s565_s5 + $0x8] sm:$0xff] }
  0x11   :  { %405 = vmatpush3.msra.mxu1 %v43_v1  ;;  %417 = vmatpush3.msra.mxu0 %v250_v8  ;;  %v247_v11 = vld [vmem:[%s565_s5] sm:$0xff]  ;;  %v213_v15 = vunpack.c.0.s8 %v212_v13  ;;  %v235_v25 = vsub.s32 0, %v215_v16 }
  0x12   :  { %407 = vmatmul.mubr.msk.f32.vlgmr.msra.gmra.mxu1 %vm45_vm0, %v42_v3  ;;  %409 = vmatprep.subr.mxu1 %v466_v5  ;;  %v385_v19 = vld [vmem:[%s564_s4] ss:$0 sm:$0xff] }
  0x13   :  { %410 = vmatpush3.msra.mxu1 %v129_v4  ;;  %413 = vmatprep.mubr.msk.f32.mxu1 %vm467_vm1, %v466_v5  ;;  %v216_v20 = vsub.s32 %v213_v15, %v215_v16 }
  0x14   :  { %411 = vmatprep.subr.mxu1 %v466_v5  ;;  %418 = vmatprep.subr.mxu0 %v249_v9 }
  0x15   :  { %412 = vmatpush3.msra.mxu1 %v128_v6  ;;  %419 = vmatpush3.msra.mxu0 %v249_v9 }
  0x16   :  { %414 = vmatmul.mubr.msk.f32.vlgmr.msra.gmra.mxu1 %vm45_vm0, %v127_v7  ;;  %420 = vmatprep.subr.mxu0 %v248_v10 }
  0x17   :  { %421 = vmatpush3.msra.mxu0 %v248_v10 }
  0x18   :  { %422 = vmatprep.subr.mxu0 %v247_v11 }
  0x19   :  { %423 = vmatpush3.msra.mxu0 %v247_v11 }
  0xd2   :  { %v408_v17 = vpop.f32.mrf.mxu1 }
  0xd4   :  { %v118_v18 = vpop.f32.mrf.mxu1 }
  0xd6   :  { %v206_v21 = vpop.f32.mrf.mxu1 }
  0xd7   :  { %v207_v22 = vadd.f32 %v385_v19, %v206_v21 }
  0xd8   :  { %v415_v23 = vpop.f32.mrf.mxu1 }
  0xd9   :  { %v217_v24 = vrot.slane %v207_v22, %v216_v20 }
  0xdb   :  { %v218_v26 = vcombine.high %v217_v24, %v217_v24  ;;  %v225_v27 = vrot.slane %v217_v24, %v216_v20 }
  0xdd   :  { %v232_v28 = vrot.slane %v218_v26, %v216_v20  ;;  %v236_v29 = vrot.slane %v225_v27, %v235_v25 }
  0xdf   :  { %v240_v30 = vrot.slane %v232_v28, %v235_v25  ;;  %v243_v31 = vadd.f32 %v236_v29, %v118_v18 }
  0xe1   :  { %v245_v32 = vmax.f32 %v243_v31, 0.0  ;;  %v244_v33 = vadd.f32 %v408_v17, %v240_v30 }
  0xe3   :  { %424 = vmatprep.mubr.msk.f32.mxu0 %vm251_vm2, %v245_v32  ;;  %v246_v34 = vmax.f32 %v244_v33, 0.0 }
  0xe5   :  { %425 = vmatmul.mubr.msk.f32.vlgmr.msra.gmra.mxu0 %vm251_vm2, %v246_v34 }
 0x1a5   :  { %v426_v36 = vpop.f32.mrf.mxu0 }
 0x1a6   :  { %v336_v37 = vadd.f32 %v426_v36, %v334_v35 }
 0x1a7   :  { %v324_v38 = vpop.f32.mrf.mxu0 }
 0x1a8   :  { %v345_v39 = vsel %vm337_vm3, %v336_v37, -inf  ;;  %v335_v40 = vadd.f32 %v334_v35, %v324_v38 }
 0x1a9   :  { %v346_v41 = vrot.slane %v345_v39, 4 }
 0x1aa   :  { %v338_v42 = vsel %vm337_vm3, %v335_v40, -inf }
 0x1ab   :  { %v347_v43 = vmax.f32 %v345_v39, %v346_v41  ;;  %v339_v44 = vrot.slane %v338_v42, 4 }
 0x1ad   :  { %v348_v45 = vrot.slane %v347_v43, 2  ;;  %v340_v46 = vmax.f32 %v338_v42, %v339_v44 }
 0x1af   :  { %v349_v47 = vmax.f32 %v347_v43, %v348_v45  ;;  %v341_v48 = vrot.slane %v340_v46, 2 }
 0x1b1   :  { %v350_v49 = vrot.slane %v349_v47, 1  ;;  %v342_v50 = vmax.f32 %v340_v46, %v341_v48 }
 0x1b3   :  { %v351_v51 = vmax.f32 %v349_v47, %v350_v49  ;;  %v343_v52 = vrot.slane %v342_v50, 1 }
 0x1b5   :  { %v353_v53 = vsub.f32 %v336_v37, %v351_v51  ;;  %v344_v54 = vmax.f32 %v342_v50, %v343_v52 }
 0x1b7   :  { %v356_v55 = vmul.f32 1.442695, %v353_v53  ;;  %v352_v56 = vsub.f32 %v335_v40, %v344_v54 }
 0x1b9   :  { %433 = vpow2.f32 %v356_v55  ;;  %v354_v57 = vmul.f32 1.442695, %v352_v56 }
 0x1bb   :  { %435 = vpow2.f32 %v354_v57 }
 0x1c6   :  { %v434_v58 = vpop.eup %433 }
 0x1c7   :  { %v365_v59 = vsel %vm337_vm3, %v434_v58, 0.0 }
 0x1c8   :  { %v436_v60 = vpop.eup %435  ;;  %v366_v61 = vrot.slane %v365_v59, 4 }
 0x1c9   :  { %v358_v62 = vsel %vm337_vm3, %v436_v60, 0.0 }
 0x1ca   :  { %v367_v63 = vadd.f32 %v366_v61, %v365_v59  ;;  %v359_v0 = vrot.slane %v358_v62, 4 }
 0x1cc   :  { %v368_v1 = vrot.slane %v367_v63, 2  ;;  %v360_v2 = vadd.f32 %v359_v0, %v358_v62 }
 0x1ce   :  { %v369_v3 = vadd.f32 %v368_v1, %v367_v63  ;;  %v361_v4 = vrot.slane %v360_v2, 2 }
 0x1d0   :  { %v370_v5 = vrot.slane %v369_v3, 1  ;;  %v362_v6 = vadd.f32 %v361_v4, %v360_v2 }
 0x1d2   :  { %v371_v7 = vadd.f32 %v370_v5, %v369_v3  ;;  %v363_v8 = vrot.slane %v362_v6, 1 }
 0x1d4   :  { %437 = vrcp.f32 %v371_v7  ;;  %v364_v9 = vadd.f32 %v363_v8, %v362_v6 }
 0x1d6   :  { %439 = vrcp.f32 %v364_v9 }
 0x1e1   :  { %v438_v10 = vpop.eup %437 }
 0x1e2   :  { %v375_v11 = vmul.f32 %v438_v10, %v434_v58 }
 0x1e3   :  { %v440_v12 = vpop.eup %439 }
 0x1e4   :  { %377 = vst.msk [vmem:[%s567_s7 + $0x8] sm:$0xff] %vm337_vm3, %v375_v11  ;;  %v374_v13 = vmul.f32 %v440_v12, %v436_v60 }
 0x1e6   :  { %376 = vst.msk [vmem:[%s567_s7] sm:$0xff] %vm337_vm3, %v374_v13 }
 0x1e7   :  { %382 = vsyncpa [#allocation4], 1 }

</bundles_post_ra>
